<compile_context>
chip_gen: v6e
topology: v6e:2x2x1
jax: 0.10.0
libtpu: 0.0.40
codegen_flags: <defaults>
</compile_context>

<pallas_src>
from functools import partial

import jax
import jax.numpy as jnp
from jax import lax
from jax.experimental import pallas as pl
from jax.experimental.pallas import tpu as pltpu

NUM_CLASSES = 11 + 168 + 7  # 186, as in the PyTorch module


def _round_up(x, m):
    return (x + m - 1) // m * m


def _backbone_kernel(x_ref, cw_ref, cb_ref, out_ref, acc_ref, *,
                     chunk_h, n_chunks, w_out, cp, inv_p):
    """One batch element: fused 3x3 conv (single K=9*Cp matmul per row chunk),
    bias + ReLU in f32, and global-average-pool accumulation."""
    acc_ref[...] = jnp.zeros_like(acc_ref)        # fresh GAP sum per image
    tp = chunk_h * w_out                          # spatial positions per chunk

    def chunk_body(c, carry):
        i0 = pl.multiple_of(c * chunk_h, chunk_h)
        # halo rows for this chunk, read once from VMEM: [chunk_h+2, W+2, Cp]
        rows = x_ref[pl.ds(i0, chunk_h + 2), :, :]
        # pack the nine (di, dj) shifted windows along the lane axis so the
        # conv becomes ONE MXU matmul with K = 9*Cp (instead of nine K=Cp dots)
        windows = []
        for di in range(3):
            for dj in range(3):
                windows.append(
                    rows[di:di + chunk_h, dj:dj + w_out, :].reshape(tp, cp))
        lhs = jnp.concatenate(windows, axis=-1)    # [tp, 9*Cp]  (bf16)
        feat = jnp.dot(lhs, cw_ref[...],           # [tp, Dp]    (f32 acc)
                       preferred_element_type=jnp.float32)
        feat = jnp.maximum(feat + cb_ref[...], 0.0)            # f32 bias+ReLU
        acc_ref[...] += jnp.sum(feat, axis=0, keepdims=True)   # GAP partial
        return carry

    lax.fori_loop(0, n_chunks, chunk_body, 0)
    out_ref[...] = (acc_ref[...] * inv_p).astype(out_ref.dtype)


@partial(jax.jit, static_argnames=("chunk_h",))
def pretrained_wrapper_forward(x_nhwc, conv_w, conv_b, head_w, head_b,
                               *, chunk_h=None):
    """x_nhwc: [B, H, W, C]; conv_w: [9*C, D] in (di, dj, c) row order;
    conv_b: [D]; head_w: [D, N]; head_b: [N].  Returns [B, N] logits."""
    B, H, W, C = x_nhwc.shape
    K9, D = conv_w.shape
    assert K9 == 9 * C
    N = head_w.shape[1]

    Cp = _round_up(max(C, 8), 8)        # channel pad (sublane-friendly)
    Dp = _round_up(D, 128)              # lane-dense feature dim

    if chunk_h is None:
        # keep ~<=256 rows of `feat` live per matmul (avoid vreg spills);
        # falls back to 1 (correct, slower) if H has no fitting divisor.
        divisors = [d for d in range(1, H + 1) if H % d == 0]
        fitting = [d for d in divisors if d * W <= 256]
        chunk_h = max(fitting) if fitting else 1
    assert H % chunk_h == 0
    n_chunks = H // chunk_h

    # single fused pad: halo (pad=1 on H, W) + channel pad; bf16 for the MXU.
    xp = jnp.pad(x_nhwc, ((0, 0), (1, 1), (1, 1), (0, Cp - C))
                 ).astype(jnp.bfloat16)                    # [B, H+2, W+2, Cp]

    # conv weights stay in (di, dj, c) row order with c padded to Cp; bf16.
    cw = conv_w.reshape(9, C, D)
    cw = jnp.pad(cw, ((0, 0), (0, Cp - C), (0, Dp - D))
                 ).reshape(9 * Cp, Dp).astype(jnp.bfloat16)
    cb = jnp.pad(conv_b.reshape(1, D), ((0, 0), (0, Dp - D))
                 ).astype(jnp.float32)

    kernel = partial(_backbone_kernel, chunk_h=chunk_h, n_chunks=n_chunks,
                     w_out=W, cp=Cp, inv_p=1.0 / (H * W))

    pooled = pl.pallas_call(
        kernel,
        out_shape=jax.ShapeDtypeStruct((B, 1, Dp), jnp.float32),
        grid_spec=pltpu.PrefetchScalarGridSpec(
            num_scalar_prefetch=0,
            grid=(B,),
            in_specs=[
                # whole padded image for this batch element (single copy,
                # every row DMA'd exactly once)
                pl.BlockSpec((None, H + 2, W + 2, Cp), lambda b: (b, 0, 0, 0)),
                pl.BlockSpec((9 * Cp, Dp), lambda b: (0, 0)),   # conv_w (resident)
                pl.BlockSpec((1, Dp), lambda b: (0, 0)),        # conv_b (resident)
            ],
            out_specs=pl.BlockSpec((None, 1, Dp), lambda b: (b, 0, 0)),
            scratch_shapes=[pltpu.VMEM((1, Dp), jnp.float32)],  # GAP accumulator
        ),
        compiler_params=pltpu.CompilerParams(
            dimension_semantics=("parallel",),
            vmem_limit_bytes=32 * 1024 * 1024,   # safe on v5e/v6e/v7x
        ),
    )(xp, cw, cb)

    pooled = pooled[:, 0, :D]                                  # [B, D] f32
    # head linear outside the kernel (better MXU shape, simpler finalize)
    return jnp.dot(pooled, head_w,
                   precision=lax.Precision.HIGHEST) + head_b


def _im2col_3x3(x):
    """x: [B, H, W, C] -> patches [B, H*W, 9*C] in (di, dj, c) order."""
    B, H, W, C = x.shape
    xp = jnp.pad(x, ((0, 0), (1, 1), (1, 1), (0, 0)))
    cols = []
    for di in range(3):
        for dj in range(3):
            cols.append(xp[:, di:di + H, dj:dj + W, :])
    patches = jnp.stack(cols, axis=-2)               # [B, H, W, 9, C]
    return patches.reshape(B, H * W, 9 * C)


def _reference_forward(x_nhwc, conv_w, conv_b, head_w, head_b):
    """Pure-JAX reference.  Conv operands are bf16-rounded to match the
    kernel's bf16 MXU inputs (accumulation in f32 in both)."""
    xq = x_nhwc.astype(jnp.bfloat16).astype(jnp.float32)
    cwq = conv_w.astype(jnp.bfloat16).astype(jnp.float32)
    patches = _im2col_3x3(xq)
    feat = jnp.einsum('bpk,kd->bpd', patches, cwq,
                      precision=lax.Precision.HIGHEST) + conv_b
    feat = jnp.maximum(feat, 0.0)
    pooled = jnp.mean(feat, axis=1)
    return jnp.dot(pooled, head_w,
                   precision=lax.Precision.HIGHEST) + head_b


if __name__ == "__main__":
    # small shapes consistent with the module's forward (an image classifier)
    B, C, H, W = 2, 4, 16, 16
    DIM_FEATS = 32          # self.model.last_linear.in_features

    key = jax.random.PRNGKey(0)
    kx, kcw, kcb, khw, khb = jax.random.split(key, 5)

    # PyTorch conv inputs are NCHW; the kernel uses NHWC
    x_nchw = jax.random.normal(kx, (B, C, H, W), dtype=jnp.float32)
    x_nhwc = jnp.transpose(x_nchw, (0, 2, 3, 1))

    # deterministic synthetic parameters (conv_w rows in (di, dj, c) order)
    conv_w = jax.random.normal(kcw, (9 * C, DIM_FEATS), dtype=jnp.float32) * 0.1
    conv_b = jax.random.normal(kcb, (DIM_FEATS,), dtype=jnp.float32) * 0.01
    head_w = jax.random.normal(khw, (DIM_FEATS, NUM_CLASSES), dtype=jnp.float32) * 0.1
    head_b = jax.random.normal(khb, (NUM_CLASSES,), dtype=jnp.float32) * 0.01

    # chunk_h=8 -> two row chunks per image, exercising the in-kernel
    # fori_loop + GAP accumulation path.
    out = pretrained_wrapper_forward(x_nhwc, conv_w, conv_b, head_w, head_b,
                                     chunk_h=8)
    out = jax.block_until_ready(out)

    ref = _reference_forward(x_nhwc, conv_w, conv_b, head_w, head_b)
    assert out.shape == (B, NUM_CLASSES), out.shape
    assert jnp.allclose(out, ref, atol=1e-3, rtol=1e-3), "mismatch vs reference"

    print("KERNEL_OK")
</pallas_src>

<mosaic_0001>
module attributes {stable_mosaic.version = 11 : i64} {
  func.func @_backbone_kernel(%arg0: i32, %arg1: memref<1x18x18x8xbf16, #tpu.memory_space<vmem>>, %arg2: memref<72x128xbf16, #tpu.memory_space<vmem>>, %arg3: memref<1x128xf32, #tpu.memory_space<vmem>>, %arg4: memref<1x1x128xf32, #tpu.memory_space<vmem>>, %arg5: memref<1x128xf32, #tpu.memory_space<vmem>>) attributes {dimension_semantics = [#tpu.dimension_semantics<parallel>], iteration_bounds = array<i64: 2>, scalar_prefetch = 0 : i64, scratch_operands = 1 : i64, tpu.core_type = #tpu.core_type<tc>, window_params = [{transform_indices = @transform_0, window_bounds = array<i64: 1, 18, 18, 8>}, {pipeline_mode = #tpu.pipeline_mode<synchronous>, transform_indices = @transform_1, window_bounds = array<i64: 72, 128>}, {pipeline_mode = #tpu.pipeline_mode<synchronous>, transform_indices = @transform_2, window_bounds = array<i64: 1, 128>}, {transform_indices = @transform_3, window_bounds = array<i64: 1, 1, 128>}]} {
    %cst = arith.constant 0.000000e+00 : f32
    %0 = vector.broadcast %cst : f32 to vector<1x128xf32>
    %c0 = arith.constant 0 : index
    %c0_0 = arith.constant 0 : index
    %1 = vector.load %arg5[%c0, %c0_0] : memref<1x128xf32, #tpu.memory_space<vmem>>, vector<1x128xf32>
    tpu.vector_store %arg5[%c0, %c0_0], %0 {strides = array<i32>} : memref<1x128xf32, #tpu.memory_space<vmem>>, vector<1x128xf32>,
    %c0_i32 = arith.constant 0 : i32
    %c2_i32 = arith.constant 2 : i32
    %2 = arith.addi %c0_i32, %c2_i32 : i32
    %c1_i32 = arith.constant 1 : i32
    scf.for %arg6 = %c0_i32 to %2 step %c1_i32  : i32 {
      %c8_i32 = arith.constant 8 : i32
      %9 = arith.muli %arg6, %c8_i32 : i32
      %10 = tpu.assume_multiple %9, 8 : i32
      %c0_8 = arith.constant 0 : index
      %11 = arith.index_cast %10 : i32 to index
      %c0_9 = arith.constant 0 : index
      %c0_10 = arith.constant 0 : index
      %12 = vector.load %arg1[%c0_8, %11, %c0_9, %c0_10] : memref<1x18x18x8xbf16, #tpu.memory_space<vmem>>, vector<1x10x18x8xbf16>
      %13 = vector.shape_cast %12 : vector<1x10x18x8xbf16> to vector<10x18x8xbf16>
      %14 = vector.extract_strided_slice %13 {offsets = [0, 0, 0], sizes = [8, 16, 8], strides = [1, 1, 1]} : vector<10x18x8xbf16> to vector<8x16x8xbf16>
      %15 = vector.shape_cast %14 : vector<8x16x8xbf16> to vector<128x8xbf16>
      %16 = vector.extract_strided_slice %13 {offsets = [0, 1, 0], sizes = [8, 16, 8], strides = [1, 1, 1]} : vector<10x18x8xbf16> to vector<8x16x8xbf16>
      %17 = vector.shape_cast %16 : vector<8x16x8xbf16> to vector<128x8xbf16>
      %18 = vector.extract_strided_slice %13 {offsets = [0, 2, 0], sizes = [8, 16, 8], strides = [1, 1, 1]} : vector<10x18x8xbf16> to vector<8x16x8xbf16>
      %19 = vector.shape_cast %18 : vector<8x16x8xbf16> to vector<128x8xbf16>
      %20 = vector.extract_strided_slice %13 {offsets = [1, 0, 0], sizes = [8, 16, 8], strides = [1, 1, 1]} : vector<10x18x8xbf16> to vector<8x16x8xbf16>
      %21 = vector.shape_cast %20 : vector<8x16x8xbf16> to vector<128x8xbf16>
      %22 = vector.extract_strided_slice %13 {offsets = [1, 1, 0], sizes = [8, 16, 8], strides = [1, 1, 1]} : vector<10x18x8xbf16> to vector<8x16x8xbf16>
      %23 = vector.shape_cast %22 : vector<8x16x8xbf16> to vector<128x8xbf16>
      %24 = vector.extract_strided_slice %13 {offsets = [1, 2, 0], sizes = [8, 16, 8], strides = [1, 1, 1]} : vector<10x18x8xbf16> to vector<8x16x8xbf16>
      %25 = vector.shape_cast %24 : vector<8x16x8xbf16> to vector<128x8xbf16>
      %26 = vector.extract_strided_slice %13 {offsets = [2, 0, 0], sizes = [8, 16, 8], strides = [1, 1, 1]} : vector<10x18x8xbf16> to vector<8x16x8xbf16>
      %27 = vector.shape_cast %26 : vector<8x16x8xbf16> to vector<128x8xbf16>
      %28 = vector.extract_strided_slice %13 {offsets = [2, 1, 0], sizes = [8, 16, 8], strides = [1, 1, 1]} : vector<10x18x8xbf16> to vector<8x16x8xbf16>
      %29 = vector.shape_cast %28 : vector<8x16x8xbf16> to vector<128x8xbf16>
      %30 = vector.extract_strided_slice %13 {offsets = [2, 2, 0], sizes = [8, 16, 8], strides = [1, 1, 1]} : vector<10x18x8xbf16> to vector<8x16x8xbf16>
      %31 = vector.shape_cast %30 : vector<8x16x8xbf16> to vector<128x8xbf16>
      %32 = tpu.concatenate %15, %17, %19, %21, %23, %25, %27, %29, %31 in 1 : vector<128x8xbf16>, vector<128x8xbf16>, vector<128x8xbf16>, vector<128x8xbf16>, vector<128x8xbf16>, vector<128x8xbf16>, vector<128x8xbf16>, vector<128x8xbf16>, vector<128x8xbf16> -> vector<128x72xbf16>
      %c0_11 = arith.constant 0 : index
      %c0_12 = arith.constant 0 : index
      %33 = vector.load %arg2[%c0_11, %c0_12] : memref<72x128xbf16, #tpu.memory_space<vmem>>, vector<72x128xbf16>
      %cst_13 = arith.constant dense<0.000000e+00> : vector<128x128xf32>
      %34 = tpu.matmul %32, %33, %cst_13 {dimension_numbers = #tpu.dot_dimension_numbers<[1], [0], [0], [1], [0, 0, 1, 1], [], []>} : vector<128x72xbf16>, vector<72x128xbf16>, vector<128x128xf32> -> vector<128x128xf32>
      %c0_14 = arith.constant 0 : index
      %c0_15 = arith.constant 0 : index
      %35 = vector.load %arg3[%c0_14, %c0_15] : memref<1x128xf32, #tpu.memory_space<vmem>>, vector<1x128xf32>
      %36 = vector.broadcast %35 : vector<1x128xf32> to vector<128x128xf32>
      %37 = arith.addf %34, %36 : vector<128x128xf32>
      %cst_16 = arith.constant 0.000000e+00 : f32
      %38 = vector.broadcast %cst_16 : f32 to vector<128x128xf32>
      %39 = arith.maximumf %37, %38 : vector<128x128xf32>
      %c0_17 = arith.constant 0 : index
      %c0_18 = arith.constant 0 : index
      %40 = vector.load %arg5[%c0_17, %c0_18] : memref<1x128xf32, #tpu.memory_space<vmem>>, vector<1x128xf32>
      %cst_19 = arith.constant dense<0.000000e+00> : vector<128xf32>
      %41 = vector.multi_reduction <add>, %39, %cst_19 [0] : vector<128x128xf32> to vector<128xf32>
      %42 = vector.shape_cast %41 : vector<128xf32> to vector<1x128xf32>
      %43 = arith.addf %40, %42 : vector<1x128xf32>
      %c0_20 = arith.constant 0 : index
      %c0_21 = arith.constant 0 : index
      %44 = vector.load %arg5[%c0_20, %c0_21] : memref<1x128xf32, #tpu.memory_space<vmem>>, vector<1x128xf32>
      tpu.vector_store %arg5[%c0_20, %c0_21], %43 {strides = array<i32>} : memref<1x128xf32, #tpu.memory_space<vmem>>, vector<1x128xf32>,
    }
    %c2_i32_1 = arith.constant 2 : i32
    %c0_2 = arith.constant 0 : index
    %c0_3 = arith.constant 0 : index
    %3 = vector.load %arg5[%c0_2, %c0_3] : memref<1x128xf32, #tpu.memory_space<vmem>>, vector<1x128xf32>
    %cst_4 = arith.constant 3.906250e-03 : f32
    %4 = vector.broadcast %cst_4 : f32 to vector<1x128xf32>
    %5 = arith.mulf %3, %4 : vector<1x128xf32>
    %c0_5 = arith.constant 0 : index
    %c0_6 = arith.constant 0 : index
    %c0_7 = arith.constant 0 : index
    %6 = vector.load %arg4[%c0_5, %c0_6, %c0_7] : memref<1x1x128xf32, #tpu.memory_space<vmem>>, vector<1x1x128xf32>
    %7 = vector.shape_cast %6 : vector<1x1x128xf32> to vector<1x128xf32>
    %8 = vector.shape_cast %5 : vector<1x128xf32> to vector<1x1x128xf32>
    tpu.vector_store %arg4[%c0_5, %c0_6, %c0_7], %8 {strides = array<i32>} : memref<1x1x128xf32, #tpu.memory_space<vmem>>, vector<1x1x128xf32>,
    return
  }
  func.func @transform_0(%arg0: i32) -> (i32, i32, i32, i32) {
    %c0_i32 = arith.constant 0 : i32
    %c0_i32_0 = arith.constant 0 : i32
    %c0_i32_1 = arith.constant 0 : i32
    %c0_i32_2 = arith.constant 0 : i32
    return %arg0, %c0_i32, %c0_i32_0, %c0_i32_1 : i32, i32, i32, i32
  }
  func.func @transform_1(%arg0: i32) -> (i32, i32) {
    %c0_i32 = arith.constant 0 : i32
    %c0_i32_0 = arith.constant 0 : i32
    %c0_i32_1 = arith.constant 0 : i32
    return %c0_i32, %c0_i32_0 : i32, i32
  }
  func.func @transform_2(%arg0: i32) -> (i32, i32) {
    %c0_i32 = arith.constant 0 : i32
    %c0_i32_0 = arith.constant 0 : i32
    %c0_i32_1 = arith.constant 0 : i32
    return %c0_i32, %c0_i32_0 : i32, i32
  }
  func.func @transform_3(%arg0: i32) -> (i32, i32, i32) {
    %c0_i32 = arith.constant 0 : i32
    %c0_i32_0 = arith.constant 0 : i32
    %c0_i32_1 = arith.constant 0 : i32
    return %arg0, %c0_i32, %c0_i32_0 : i32, i32, i32
  }
}

</mosaic_0001>

<bundles_post_ra>
// kernel: pretrained_wrapper_forward.1
= control target key start
LH: loop header
LB: loop body
LE: loop exit
PB: predicated region body
PF: predicated region fallthrough
CT: control target
= control target key end

     0   :  { %s1378_s12 = smov 0   ;;  %s1928_s0 = inlined_call_operand.vmem [shape: bf16[2,18,18,8], index: 0, kind: input, shape index: {}]   ;;  %s1929_s1 = inlined_call_operand.vmem [shape: bf16[72,128], index: 1, kind: input, shape index: {}]   ;;  %s1930_s2 = inlined_call_operand.vmem [shape: f32[1,128], index: 2, kind: input, shape index: {}]   ;;  %s1931_s3 = inlined_call_operand.vmem [shape: f32[2,1,128], index: 3, kind: output, shape index: {}]  }
   0x1 LB: > { %s1175_s13 = sadd.s32 4294967295, %s1343_s12   ;;  %p1179_p0 = scmp.ge.s32.totalorder %s1343_s12, 1  ;;  %s1343_s12 = sphi %s1378_s12, %s13_s12  }
   0x2   : > { %p137_p1 = scmp.lt.s32.totalorder %s1343_s12, 3 }
   0x4   : > { %p138_p2 = pnand %p1179_p0, %p137_p1 }
   0x5   : > { %p159_p3 = scmp.lt.s32.totalorder (!%p138_p2), %s1175_s13, 1  ;;  %s1398_s21 = smov (!%p138_p2), 0  }
   0x6   : > { %141 = sbr.rel (%p138_p2) target bundleno = 503 (0x1f7), region = 32 }
   0xb   : > { %v1349_v0 = vmov 0.0   ;;  %s1937_s13 = smov (!%p159_p3, %s1175_s13), 1 }
   0xc   : > { %168 = vst [vmem:[#allocation2] sm:$0x1] %v1349_v0  ;;  %s1292_s14 = smul.u32 216, %s1937_s13  ;;  %s166_s17 = scalar_lea.vmem %s1931_s3, %s1937_s13 }
   0xe   : > { %s1396_s20 = scalar_lea.vmem %s1928_s0, %s1292_s14 }
   0xf LB: >> { %s1240_s22 = smul.u32 96, %s1347_s21  ;;  %vm428_vm0 = vcmask 1042432   ;;  %vm429_vm1 = vcmask 1046532   ;;  %vm209_vm2 = vsmask.f32 3328  ;;  %s1350_s24 = smov 24   ;;  %s1347_s21 = sphi %s1398_s21, %s174_s21  }
  0x10   : >> { %vm210_vm3 = vsmask.f32 7440  ;;  %vm1427_vm4 = vmor %vm428_vm0, %vm429_vm1  ;;  %s1351_s25 = smov 40   ;;  %s1352_s26 = smov 16   ;;  %vm977_vm6 = vcmask 1043456   ;;  %v1332_v14 = vld [vmem:[%s1929_s1] sm:$0xff]  }
  0x11   : >> { %s1405_s23 = scalar_lea.vmem %s1396_s20, %s1240_s22  ;;  %vm1462_vm5 = vmor %vm209_vm2, %vm210_vm3  ;;  %s1353_s27 = smov 8   ;;  %vm773_vm7 = vcmask 64512   ;;  %vm798_vm8 = vcmask 130048   ;;  %vm815_vm9 = vcmask 195584   ;;  %vm832_vm10 = vcmask 261120  }
  0x12   : >> { %v1408_v1 = vld [vmem:[%s1405_s23 + $0x18] sm:$0xf]  ;;  %v1411_v2 = vld [vmem:[%s1405_s23 + $0x1c] sm:$0xf]  ;;  %v182_v3 = vld [vmem:[%s1405_s23 + $0xc] sm:$0xf] }
  0x13   : >> { %v274_v4 = vshrl.u32 %v1411_v2, 16  ;;  %v1417_v5 = vcombine.low %v1408_v1, %v1411_v2  ;;  %v261_v6 = vshrl.u32 %v1408_v1, 16  ;;  %v264_v7 = vshll.u32 %v1408_v1, 16  ;;  %v183_v8 = vld [vmem:[%s1405_s23 + $0x10] sm:$0xf]  ;;  %s1354_s28 = smov 32  }
  0x14   : >> { %v246_v9 = vshll.u32 %v183_v8, 16  ;;  %v250_v10 = vshrl.u32 %v183_v8, 16  ;;  %v1422_v11 = vcombine.low %v182_v3, %v183_v8  ;;  %v237_v12 = vshrl.u32 %v182_v3, 16  ;;  %v184_v13 = vld [vmem:[%s1405_s23 + $0x14] sm:$0x1]  ;;  %s1355_s29 = smov 48  }
  0x15   : >> { %664 = vrot.lane.b32.xlu1 %v1417_v5, %s1350_s24  ;;  %v240_v15 = vshll.u32 %v182_v3, 16  ;;  %v1185_v16 = vrot.slane %v182_v3, 9  ;;  %v440_v17 = vrot.slane %v183_v8, 5  ;;  %v443_v18 = vrot.slane %v184_v13, 5  ;;  %v1434_v19 = vld [vmem:[%s1405_s23] sm:$0xf] }
  0x16   : >> { %v252_v20 = vrot.slane %v250_v10, 4  ;;  %662 = vrot.lane.b32.xlu0 %v1422_v11, %s1350_s24  ;;  %v239_v21 = vrot.slane %v237_v12, 4  ;;  %v1439_v22 = vld [vmem:[%s1405_s23 + $0x4] sm:$0xf]  ;;  %v181_v23 = vld [vmem:[%s1405_s23 + $0x8] sm:$0x1] }
  0x17   : >> { %v242_v24 = vrot.slane %v240_v15, 5  ;;  %v441_v25 = vsel %vm1427_vm4, %v1185_v16, %v440_v17  ;;  %v442_v26 = vrot.slane %v440_v17, 4  ;;  %v1184_v27 = vrot.slane %v1434_v19, 9  ;;  %v187_v36 = vld [vmem:[%s1405_s23 + $0x20] sm:$0x1]  ;;  %s1356_s30 = smov 56  }
  0x18   : >> { %v433_v28 = vrot.slane %v1439_v22, 5  ;;  %v436_v29 = vrot.slane %v181_v23, 5  ;;  %v213_v30 = vshrl.u32 %v1434_v19, 16  ;;  %v216_v31 = vshll.u32 %v1434_v19, 16  ;;  %v1476_v8 = vld [vmem:[%s1405_s23 + $0x24] sm:$0xf] }
  0x19   : >> { %v444_v32 = vsel %vm1427_vm4, %v442_v26, %v443_v18  ;;  %v222_v33 = vshll.u32 %v1439_v22, 16  ;;  %v226_v34 = vshrl.u32 %v1439_v22, 16  ;;  %v232_v35 = vshll.u32 %v181_v23, 16  ;;  %s1357_s4 = smov 64   ;;  %s174_s21 = sadd.s32 1, %s1347_s21  }
  0x1a   : >> { %v1211_v37 = vcombine.low %v441_v25, %v444_v32  ;;  %v434_v38 = vsel %vm1427_vm4, %v1184_v27, %v433_v28  ;;  %v435_v39 = vrot.slane %v433_v28, 4  ;;  %v215_v40 = vrot.slane %v213_v30, 4  ;;  %v190_v27 = vld [vmem:[%s1405_s23 + $0x2c] sm:$0x1]  ;;  %p171_p4 = scmp.ge.s32.totalorder %s174_s21, 2  }
  0x1b   : >> { %v218_v41 = vrot.slane %v216_v31, 5  ;;  %v224_v42 = vrot.slane %v222_v33, 5  ;;  %v228_v43 = vrot.slane %v226_v34, 4  ;;  %v234_v44 = vrot.slane %v232_v35, 5 }
  0x1c   : >> { %700 = vrot.lane.b32.xlu0 %v1211_v37, %s1351_s25  ;;  %v437_v45 = vsel %vm1427_vm4, %v435_v39, %v436_v29  ;;  %v1186_v46 = vrot.slane %v1408_v1, 9  ;;  %v447_v47 = vrot.slane %v1411_v2, 5  ;;  %v450_v48 = vrot.slane %v187_v36, 5 }
  0x1d   : >> { %v1210_v49 = vcombine.low %v434_v38, %v437_v45  ;;  %v219_v50 = vor.u32 %v218_v41, %v215_v40  ;;  %v229_v51 = vor.u32 %v228_v43, %v224_v42  ;;  %v243_v52 = vor.u32 %v242_v24, %v239_v21  ;;  %v192_v40 = vld [vmem:[%s1405_s23 + $0x34] sm:$0xf] }
  0x1e   : >> { %v448_v54 = vsel %vm1427_vm4, %v1186_v46, %v447_v47  ;;  %v449_v55 = vrot.slane %v447_v47, 4  ;;  %v248_v56 = vrot.slane %v246_v9, 5  ;;  %v256_v57 = vshll.u32 %v184_v13, 16  ;;  %v189_v13 = vld [vmem:[%s1405_s23 + $0x28] sm:$0xf] }
  0x1f   : >> { %643 = vrot.lane.b32.xlu1 %v1210_v49, %s1352_s26  ;;  %v220_v58 = vrot.slane %v219_v50, 4  ;;  %v230_v59 = vrot.slane %v229_v51, 4  ;;  %v244_v60 = vrot.slane %v243_v52, 4  ;;  %v263_v61 = vrot.slane %v261_v6, 4 }
  0x20   : >> { %v451_v62 = vsel %vm1427_vm4, %v449_v55, %v450_v48  ;;  %v253_v63 = vor.u32 %v252_v20, %v248_v56  ;;  %v258_v0 = vrot.slane %v256_v57, 5  ;;  %v266_v3 = vrot.slane %v264_v7, 5  ;;  %v193_v48 = vld [vmem:[%s1405_s23 + $0x38] sm:$0x1] }
  0x21   : >> { %v225_v9 = vsel %vm1462_vm5, %v220_v58, %v224_v42  ;;  %v235_v10 = vsel %vm1462_vm5, %v230_v59, %v234_v44  ;;  %v1482_v12 = vcombine.low %v448_v54, %v451_v62  ;;  %v249_v6 = vsel %vm1462_vm5, %v244_v60, %v248_v56  ;;  %v1523_v62 = vld [vmem:[%s1405_s23 + $0x3c] sm:$0xf] }
  0x22   : >> { %v1202_v15 = vcombine.low %v225_v9, %v235_v10  ;;  %v254_v16 = vrot.slane %v253_v63, 4  ;;  %v267_v17 = vor.u32 %v266_v3, %v263_v61  ;;  %v270_v1 = vshll.u32 %v1411_v2, 16  ;;  %v1498_v2 = vld [vmem:[%s1405_s23 + $0x30] sm:$0xf] }
  0x23   : >> { %645 = vrot.lane.b32.xlu1 %v1211_v37, %s1352_s26  ;;  %v276_v7 = vrot.slane %v274_v4, 4  ;;  %v280_v18 = vshll.u32 %v187_v36, 16  ;;  %v285_v20 = vshrl.u32 %v1476_v8, 16  ;;  %v288_v21 = vshll.u32 %v1476_v8, 16 }
  0x24   : >> { %603 = vrot.lane.b32.xlu0 %v1202_v15, %s1353_s27  ;;  %v259_v23 = vsel %vm1462_vm5, %v254_v16, %v258_v0  ;;  %v268_v24 = vrot.slane %v267_v17, 4  ;;  %v272_v25 = vrot.slane %v270_v1, 5  ;;  %v298_v26 = vshrl.u32 %v189_v13, 16 }
  0x25   : >> { %v1203_v28 = vcombine.low %v249_v6, %v259_v23  ;;  %v287_v29 = vrot.slane %v285_v20, 4  ;;  %v282_v30 = vrot.slane %v280_v18, 5  ;;  %v290_v31 = vrot.slane %v288_v21, 5 }
  0x26   : >> { %v277_v4 = vor.u32 %v276_v7, %v272_v25  ;;  %v294_v32 = vshll.u32 %v189_v13, 16  ;;  %v300_v33 = vrot.slane %v298_v26, 4  ;;  %v304_v34 = vshll.u32 %v190_v27, 16 }
  0x27   : >> { %702 = vrot.lane.b32.xlu1 %v1482_v12, %s1351_s25  ;;  %v454_v35 = vrot.slane %v189_v13, 5  ;;  %v273_v36 = vsel %vm1462_vm5, %v268_v24, %v272_v25  ;;  %v291_v38 = vor.u32 %v290_v31, %v287_v29  ;;  %v1187_v42 = vrot.slane %v1476_v8, 9  ;;  %v1559_v31 = vld [vmem:[%s1405_s23 + $0x4c] sm:$0xf] }
  0x28   : >> { %605 = vrot.lane.b32.xlu0 %v1203_v28, %s1353_s27  ;;  %v278_v37 = vrot.slane %v277_v4, 4  ;;  %v296_v39 = vrot.slane %v294_v32, 5  ;;  %v306_v41 = vrot.slane %v304_v34, 5  ;;  %v309_v43 = vshrl.u32 %v1498_v2, 16 }
  0x29   : >> { %v292_v45 = vrot.slane %v291_v38, 4  ;;  %v312_v47 = vshll.u32 %v1498_v2, 16  ;;  %v456_v50 = vrot.slane %v454_v35, 4  ;;  %v457_v51 = vrot.slane %v190_v27, 5  ;;  %v1546_v27 = vld [vmem:[%s1405_s23 + $0x48] sm:$0xf] }
  0x2a   : >> { %v283_v44 = vsel %vm1462_vm5, %v278_v37, %v282_v30  ;;  %v301_v46 = vor.u32 %v300_v33, %v296_v39  ;;  %v322_v52 = vshrl.u32 %v192_v40, 16  ;;  %v1516_v54 = vcombine.low %v1476_v8, %v189_v13  ;;  %v1533_v13 = vld [vmem:[%s1405_s23 + $0x40] sm:$0xf]  ;;  %v1556_v30 = vld [vmem:[%s1405_s23 + $0x44] sm:$0x1] }
  0x2b   : >> { %v1512_v49 = vcombine.low %v273_v36, %v283_v44  ;;  %v297_v55 = vsel %vm1462_vm5, %v292_v45, %v296_v39  ;;  %v311_v57 = vrot.slane %v309_v43, 4  ;;  %v314_v58 = vrot.slane %v312_v47, 5  ;;  %v199_v43 = vld [vmem:[%s1405_s23 + $0x50] sm:$0x1] }
  0x2c   : >> { %681 = vrot.lane.b32.xlu0 %v1203_v28, %s1354_s28  ;;  %v302_v56 = vrot.slane %v301_v46, 4  ;;  %v318_v59 = vshll.u32 %v192_v40, 16  ;;  %v324_v60 = vrot.slane %v322_v52, 4  ;;  %v328_v61 = vshll.u32 %v193_v48, 16 }
  0x2d   : >> { %683 = vrot.lane.b32.xlu1 %v1512_v49, %s1354_s28  ;;  %v455_v0 = vsel %vm1427_vm4, %v1187_v42, %v454_v35  ;;  %v461_v3 = vrot.slane %v192_v40, 5  ;;  %v458_v8 = vsel %vm1427_vm4, %v456_v50, %v457_v51  ;;  %v315_v9 = vor.u32 %v314_v58, %v311_v57 }
  0x2e   : >> { %v307_v63 = vsel %vm1462_vm5, %v302_v56, %v306_v41  ;;  %v320_v10 = vrot.slane %v318_v59, 5  ;;  %v1188_v6 = vrot.slane %v1498_v2, 9  ;;  %v464_v16 = vrot.slane %v193_v48, 5 }
  0x2f   : >> { %v1537_v15 = vcombine.low %v297_v55, %v307_v63  ;;  %v333_v17 = vshrl.u32 %v1523_v62, 16  ;;  %v336_v1 = vshll.u32 %v1523_v62, 16  ;;  %v316_v7 = vrot.slane %v315_v9, 4  ;;  %v1596_v55 = vld [vmem:[%s1405_s23 + $0x54] sm:$0xf] }
  0x30   : >> { %719 = vrot.lane.b32.xlu0 %v1417_v5, %s1355_s29  ;;  %v325_v18 = vor.u32 %v324_v60, %v320_v10  ;;  %v330_v20 = vrot.slane %v328_v61, 5  ;;  %v463_v21 = vrot.slane %v461_v3, 4  ;;  %v346_v23 = vshrl.u32 %v1533_v13, 16 }
  0x31   : >> { %721 = vrot.lane.b32.xlu1 %v1516_v54, %s1355_s29  ;;  %v335_v24 = vrot.slane %v333_v17, 4  ;;  %v338_v25 = vrot.slane %v336_v1, 5  ;;  %v342_v26 = vshll.u32 %v1533_v13, 16  ;;  %v1550_v29 = vcombine.low %v455_v0, %v458_v8  ;;  %v1607_v0 = vld [vmem:[%s1405_s23 + $0x58] sm:$0xf] }
  0x32   : >> { %v326_v28 = vrot.slane %v325_v18, 4  ;;  %v1553_v4 = vcombine.low %v1498_v2, %v192_v40  ;;  %v321_v32 = vsel %vm1462_vm5, %v316_v7, %v320_v10  ;;  %v462_v33 = vsel %vm1427_vm4, %v1188_v6, %v461_v3  ;;  %v202_v7 = vld [vmem:[%s1405_s23 + $0x5c] sm:$0x1] }
  0x33   : >> { %v465_v34 = vsel %vm1427_vm4, %v463_v21, %v464_v16  ;;  %v357_v2 = vshrl.u32 %v1546_v27, 16  ;;  %v339_v36 = vor.u32 %v338_v25, %v335_v24  ;;  %v1572_v37 = vrot.slane %v342_v26, 5 }
  0x34   : >> { %738 = vrot.lane.b32.xlu0 %v1512_v49, %s1356_s30  ;;  %v331_v35 = vsel %vm1462_vm5, %v326_v28, %v330_v20  ;;  %v1574_v38 = vrot.slane %v346_v23, 4  ;;  %v1578_v39 = vcombine.low %v1523_v62, %v1533_v13  ;;  %v352_v40 = vshll.u32 %v1556_v30, 16 }
  0x35   : >> { %740 = vrot.lane.b32.xlu1 %v1537_v15, %s1356_s30  ;;  %v360_v41 = vshll.u32 %v1546_v27, 16  ;;  %v370_v42 = vshrl.u32 %v1559_v31, 16  ;;  %v1586_v44 = vcombine.low %v462_v33, %v465_v34  ;;  %v1189_v45 = vrot.slane %v1523_v62, 9 }
  0x36   : >> { %v468_v46 = vrot.slane %v1533_v13, 5  ;;  %v359_v47 = vrot.slane %v357_v2, 4  ;;  %v1592_v48 = vcombine.low %v321_v32, %v331_v35  ;;  %v366_v51 = vshll.u32 %v1559_v31, 16  ;;  %v1633_v35 = vld [vmem:[%s1405_s23 + $0x60] sm:$0xf] }
  0x37   : >> { %v362_v50 = vrot.slane %v360_v41, 5  ;;  %v372_v52 = vrot.slane %v370_v42, 4  ;;  %v1598_v56 = vrot.slane %v339_v36, 4  ;;  %v349_v57 = vor.u32 %v1574_v38, %v1572_v37 }
  0x38   : >> { %757 = vrot.lane.b32.xlu0 %v1482_v12, %s1357_s4  ;;  %v376_v58 = vshll.u32 %v199_v43, 16  ;;  %v1190_v59 = vrot.slane %v1546_v27, 9  ;;  %v1603_v60 = vrot.slane %v352_v40, 5  ;;  %v368_v61 = vrot.slane %v366_v51, 5 }
  0x39   : >> { %607 = vrot.lane.b32.xlu1 %v1512_v49, %s1353_s27  ;;  %v363_v49 = vor.u32 %v362_v50, %v359_v47  ;;  %v475_v63 = vrot.slane %v1559_v31, 5  ;;  %v478_v8 = vrot.slane %v199_v43, 5  ;;  %v381_v9 = vshrl.u32 %v1596_v55, 16 }
  0x3a   : >> { %v378_v3 = vrot.slane %v376_v58, 5  ;;  %v384_v10 = vshll.u32 %v1596_v55, 16  ;;  %v373_v16 = vor.u32 %v372_v52, %v368_v61  ;;  %v345_v18 = vsel %vm1462_vm5, %v1598_v56, %v1572_v37 }
  0x3b   : >> { %v364_v6 = vrot.slane %v363_v49, 4  ;;  %v476_v17 = vsel %vm1427_vm4, %v1190_v59, %v475_v63  ;;  %v477_v1 = vrot.slane %v475_v63, 4  ;;  %v394_v20 = vshrl.u32 %v1607_v0, 16  ;;  %v205_v49 = vld [vmem:[%s1405_s23 + $0x68] sm:$0x1] }
  0x3c   : >> { %759 = vrot.lane.b32.xlu0 %v1550_v29, %s1357_s4  ;;  %v383_v21 = vrot.slane %v381_v9, 4  ;;  %v386_v23 = vrot.slane %v384_v10, 5  ;;  %v374_v25 = vrot.slane %v373_v16, 4  ;;  %v390_v28 = vshll.u32 %v1607_v0, 16 }
  0x3d   : >> { %609 = vrot.lane.b32.xlu1 %v1537_v15, %s1353_s27  ;;  %v369_v24 = vsel %vm1462_vm5, %v364_v6, %v368_v61  ;;  %v479_v26 = vsel %vm1427_vm4, %v477_v1, %v478_v8  ;;  %v396_v34 = vrot.slane %v394_v20, 4  ;;  %v400_v2 = vshll.u32 %v202_v7, 16  ;;  %v1664_v20 = vld [vmem:[%s1405_s23 + $0x6c] sm:$0xf] }
  0x3e   : >> { %v1630_v32 = vcombine.low %v476_v17, %v479_v26  ;;  %v387_v33 = vor.u32 %v386_v23, %v383_v21  ;;  %v379_v36 = vsel %vm1462_vm5, %v374_v25, %v378_v3  ;;  %v392_v38 = vrot.slane %v390_v28, 5  ;;  %v1671_v26 = vld [vmem:[%s1405_s23 + $0x70] sm:$0xf] }
  0x3f   : >> { %v1191_v40 = vrot.slane %v1596_v55, 9  ;;  %v482_v41 = vrot.slane %v1607_v0, 5  ;;  %v1644_v42 = vcombine.low %v369_v24, %v379_v36  ;;  %v402_v47 = vrot.slane %v400_v2, 5 }
  0x40   : >> { %647 = vrot.lane.b32.xlu0 %v1482_v12, %s1352_s26  ;;  %v1642_v12 = vld [vmem:[%s1405_s23 + $0x64] sm:$0xf]  ;;  %v388_v43 = vrot.slane %v387_v33, 4  ;;  %v485_v50 = vrot.slane %v202_v7, 5  ;;  %v397_v51 = vor.u32 %v396_v34, %v392_v38  ;;  %v488_v59 = vshrl.u32 %v1633_v35, 16 }
  0x41   : >> { %649 = vrot.lane.b32.xlu1 %v1550_v29, %s1352_s26  ;;  %v483_v52 = vsel %vm1427_vm4, %v1191_v40, %v482_v41  ;;  %v484_v58 = vrot.slane %v482_v41, 4  ;;  %v350_v61 = vrot.slane %v349_v57, 4  ;;  %v491_v3 = vshll.u32 %v1633_v35, 16 }
  0x42   : >> { %v393_v63 = vsel %vm1462_vm5, %v388_v43, %v392_v38  ;;  %v501_v8 = vshrl.u32 %v1642_v12, 16  ;;  %v398_v9 = vrot.slane %v397_v51, 4  ;;  %v490_v6 = vrot.slane %v488_v59, 4  ;;  %v208_v51 = vld [vmem:[%s1405_s23 + $0x74] sm:$0x1] }
  0x43   : >> { %v486_v10 = vsel %vm1427_vm4, %v484_v58, %v485_v50  ;;  %v497_v16 = vshll.u32 %v1642_v12, 16  ;;  %v493_v57 = vrot.slane %v491_v3, 5  ;;  %v507_v7 = vshll.u32 %v205_v49, 16 }
  0x44   : >> { %666 = vrot.lane.b32.xlu0 %v1516_v54, %s1350_s24  ;;  %v1661_v17 = vcombine.low %v483_v52, %v486_v10  ;;  %v503_v1 = vrot.slane %v501_v8, 4  ;;  %v403_v21 = vsel %vm1462_vm5, %v398_v9, %v402_v47  ;;  %v1192_v24 = vrot.slane %v1633_v35, 9 }
  0x45   : >> { %668 = vrot.lane.b32.xlu1 %v1553_v4, %s1350_s24  ;;  %v499_v23 = vrot.slane %v497_v16, 5  ;;  %v516_v25 = vrot.slane %v1642_v12, 5  ;;  %v1675_v28 = vcombine.low %v393_v63, %v403_v21  ;;  %v494_v33 = vor.u32 %v493_v57, %v490_v6 }
  0x46   : >> { %v509_v34 = vrot.slane %v507_v7, 5  ;;  %v519_v2 = vrot.slane %v205_v49, 5  ;;  %v522_v41 = vshrl.u32 %v1664_v20, 16  ;;  %v355_v43 = vsel %vm1462_vm5, %v350_v61, %v1603_v60 }
  0x47   : >> { %v504_v36 = vor.u32 %v503_v1, %v499_v23  ;;  %v517_v38 = vsel %vm1427_vm4, %v1192_v24, %v516_v25  ;;  %v518_v40 = vrot.slane %v516_v25, 4  ;;  %v525_v47 = vshll.u32 %v1664_v20, 16 }
  0x48   : >> { %685 = vrot.lane.b32.xlu0 %v1537_v15, %s1354_s28  ;;  %v495_v15 = vrot.slane %v494_v33, 4  ;;  %v535_v50 = vshrl.u32 %v1671_v26, 16  ;;  %v524_v59 = vrot.slane %v522_v41, 4  ;;  %v531_v49 = vshll.u32 %v1671_v26, 16  ;;  %v1329_v33 = vld [vmem:[%s1929_s1 + $0x18] sm:$0xff]  }
  0x49   : >> { %687 = vrot.lane.b32.xlu1 %v1592_v48, %s1354_s28  ;;  %v505_v52 = vrot.slane %v504_v36, 4  ;;  %v520_v58 = vsel %vm1427_vm4, %v518_v40, %v519_v2  ;;  %v527_v61 = vrot.slane %v525_v47, 5  ;;  %v541_v10 = vshll.u32 %v208_v51, 16 }
  0x4a   : >> { %v500_v63 = vsel %vm1462_vm5, %v495_v15, %v499_v23  ;;  %v1695_v60 = vcombine.low %v517_v38, %v520_v58  ;;  %v537_v3 = vrot.slane %v535_v50, 4  ;;  %v533_v9 = vrot.slane %v531_v49, 5 }
  0x4b   : >> { %v510_v8 = vsel %vm1462_vm5, %v505_v52, %v509_v34  ;;  %v1194_v6 = vcombine.low %v1434_v19, %v1439_v22  ;;  %v470_v16 = vrot.slane %v468_v46, 4  ;;  %v471_v57 = vrot.slane %v1556_v30, 5 }
  0x4c   : >> { %704 = vrot.lane.b32.xlu0 %v1550_v29, %s1351_s25  ;;  %v1328_v29 = vld [vmem:[%s1929_s1 + $0x20] ss:$0 sps:$4 sm:$0xff]   ;;  %v1709_v1 = vcombine.low %v500_v63, %v510_v8  ;;  %v528_v7 = vor.u32 %v527_v61, %v524_v59  ;;  %v538_v21 = vor.u32 %v537_v3, %v533_v9  ;;  %v543_v23 = vrot.slane %v541_v10, 5 }
  0x4d   : >> { %706 = vrot.lane.b32.xlu1 %v1586_v44, %s1351_s25  ;;  %v1193_v24 = vrot.slane %v1664_v20, 9  ;;  %v550_v25 = vrot.slane %v1671_v26, 5  ;;  %v1207_v30 = vcombine.low %v345_v18, %v355_v43  ;;  %v553_v2 = vrot.slane %v208_v51, 5  ;;  %1290 = vmatprep.subr.msk.bf16.mxu0 %vm977_vm6, %v1328_v29  ;;  %v1330_v18 = vld [vmem:[%s1929_s1 + $0x10] sm:$0xff]   ;;  %v1331_v51 = vld [vmem:[%s1929_s1 + $0x8] sm:$0xff]  }
  0x4e   : >> { %v529_v34 = vrot.slane %v528_v7, 4  ;;  %v539_v36 = vrot.slane %v538_v21, 4  ;;  %v979_v41 = vsel %vm977_vm6, %v1328_v29, 0  ;;  %1291 = vmatprep.subr.msk.bf16.mxu1 %vm977_vm6, %v1328_v29  ;;  %v469_v53 = vsel %vm1427_vm4, %v1189_v45, %v468_v46 }
  0x4f   : >> { %v1727_v38 = vsel %vm1427_vm4, %v1193_v24, %v550_v25  ;;  %v552_v40 = vrot.slane %v550_v25, 4  ;;  %1255 = vmatpush3.bf16.msra.mxu0 %v979_v41  ;;  %1285 = vmatpush3.bf16.msra.mxu1 %v979_v41  ;;  %v472_v50 = vsel %vm1427_vm4, %v470_v16, %v471_v57  ;;  %v1770_v62 = vcombine.low %v1546_v27, %v1559_v31 }
  0x50   : >> { %723 = vrot.lane.b32.xlu0 %v1553_v4, %s1355_s29  ;;  %v534_v15 = vsel %vm1462_vm5, %v529_v34, %v533_v9  ;;  %v544_v37 = vsel %vm1462_vm5, %v539_v36, %v543_v23  ;;  %1256 = vmatprep.subr.bf16.mxu0 %v1329_v33  ;;  %v1215_v52 = vcombine.low %v469_v53, %v472_v50  ;;  %vm849_vm11 = vcmask 326656  }
  0x51   : >> { %725 = vrot.lane.b32.xlu1 %v1578_v39, %s1355_s29  ;;  %v1735_v56 = vsel %vm1427_vm4, %v552_v40, %v553_v2  ;;  %v1222_v43 = vcombine.low %v534_v15, %v544_v37  ;;  %1281 = vmatprep.subr.bf16.mxu1 %v1329_v33  ;;  %v1784_v13 = vcombine.low %v1596_v55, %v1607_v0  ;;  %vm866_vm12 = vcmask 392192  }
  0x52   : >> { %v1223_v47 = vcombine.low %v1727_v38, %v1735_v56  ;;  %v1218_v27 = vcombine.low %v1633_v35, %v1642_v12  ;;  %v1221_v45 = vcombine.low %v1664_v20, %v1671_v26  ;;  %vm883_vm13 = vcmask 457728  }
  0x53   : >> { %1257 = vmatpush3.bf16.msra.mxu0 %v1329_v33  ;;  %1286 = vmatpush3.bf16.msra.mxu1 %v1329_v33  ;;  %vm900_vm14 = vcmask 523264   ;;  %vm960_vm15 = vcmask 588800  }
  0x54   : >> { %742 = vrot.lane.b32.xlu0 %v1592_v48, %s1356_s30  ;;  %1258 = vmatprep.subr.bf16.mxu0 %v1330_v18 }
  0x55   : >> { %744 = vrot.lane.b32.xlu1 %v1207_v30, %s1356_s30  ;;  %1282 = vmatprep.subr.bf16.mxu1 %v1330_v18 }
  0x57   : >> { %1259 = vmatpush3.bf16.msra.mxu0 %v1330_v18  ;;  %1287 = vmatpush3.bf16.msra.mxu1 %v1330_v18 }
  0x58   : >> { %761 = vrot.lane.b32.xlu0 %v1586_v44, %s1357_s4  ;;  %1260 = vmatprep.subr.bf16.mxu0 %v1331_v51 }
  0x59   : >> { %611 = vrot.lane.b32.xlu1 %v1592_v48, %s1353_s27  ;;  %1283 = vmatprep.subr.bf16.mxu1 %v1331_v51 }
  0x5b   : >> { %1261 = vmatpush3.bf16.msra.mxu0 %v1331_v51  ;;  %1288 = vmatpush3.bf16.msra.mxu1 %v1331_v51 }
  0x5c   : >> { %763 = vrot.lane.b32.xlu0 %v1215_v52, %s1357_s4  ;;  %1262 = vmatprep.subr.bf16.mxu0 %v1332_v14 }
  0x5d   : >> { %613 = vrot.lane.b32.xlu1 %v1207_v30, %s1353_s27  ;;  %1284 = vmatprep.subr.bf16.mxu1 %v1332_v14 }
  0x5f   : >> { %1263 = vmatpush3.bf16.msra.mxu0 %v1332_v14  ;;  %1289 = vmatpush3.bf16.msra.mxu1 %v1332_v14 }
  0x60   : >> { %651 = vrot.lane.b32.xlu0 %v1586_v44, %s1352_s26 }
  0x61   : >> { %653 = vrot.lane.b32.xlu1 %v1215_v52, %s1352_s26 }
  0x64   : >> { %670 = vrot.lane.b32.xlu0 %v1578_v39, %s1350_s24 }
  0x65   : >> { %672 = vrot.lane.b32.xlu1 %v1770_v62, %s1350_s24 }
  0x68   : >> { %689 = vrot.lane.b32.xlu0 %v1207_v30, %s1354_s28 }
  0x69   : >> { %691 = vrot.lane.b32.xlu1 %v1644_v42, %s1354_s28 }
  0x6c   : >> { %708 = vrot.lane.b32.xlu0 %v1215_v52, %s1351_s25 }
  0x6d   : >> { %710 = vrot.lane.b32.xlu1 %v1630_v32, %s1351_s25 }
  0x70   : >> { %727 = vrot.lane.b32.xlu0 %v1770_v62, %s1355_s29 }
  0x71   : >> { %729 = vrot.lane.b32.xlu1 %v1784_v13, %s1355_s29 }
  0x74   : >> { %746 = vrot.lane.b32.xlu0 %v1644_v42, %s1356_s30 }
  0x75   : >> { %748 = vrot.lane.b32.xlu1 %v1675_v28, %s1356_s30 }
  0x78   : >> { %765 = vrot.lane.b32.xlu0 %v1630_v32, %s1357_s4 }
  0x79   : >> { %615 = vrot.lane.b32.xlu1 %v1644_v42, %s1353_s27 }
  0x7c   : >> { %767 = vrot.lane.b32.xlu0 %v1661_v17, %s1357_s4 }
  0x7d   : >> { %617 = vrot.lane.b32.xlu1 %v1675_v28, %s1353_s27 }
  0x80   : >> { %655 = vrot.lane.b32.xlu0 %v1630_v32, %s1352_s26 }
  0x81   : >> { %657 = vrot.lane.b32.xlu1 %v1661_v17, %s1352_s26 }
  0x84   : >> { %674 = vrot.lane.b32.xlu0 %v1784_v13, %s1350_s24 }
  0x85   : >> { %676 = vrot.lane.b32.xlu1 %v1218_v27, %s1350_s24 }
  0x87   : >> { %v665_v44 = vpop.permute.xlu1 %664 }
  0x88   : >> { %693 = vrot.lane.b32.xlu0 %v1675_v28, %s1354_s28  ;;  %v663_v31 = vpop.permute.xlu0 %662 }
  0x89   : >> { %695 = vrot.lane.b32.xlu1 %v1709_v1, %s1354_s28 }
  0x8c   : >> { %712 = vrot.lane.b32.xlu0 %v1661_v17, %s1351_s25 }
  0x8d   : >> { %714 = vrot.lane.b32.xlu1 %v1695_v60, %s1351_s25 }
  0x8e   : >> { %v701_v46 = vpop.permute.xlu0 %700 }
  0x90   : >> { %731 = vrot.lane.b32.xlu0 %v1218_v27, %s1355_s29 }
  0x91   : >> { %733 = vrot.lane.b32.xlu1 %v1221_v45, %s1355_s29  ;;  %v644_v48 = vpop.permute.xlu1 %643 }
  0x94   : >> { %750 = vrot.lane.b32.xlu0 %v1709_v1, %s1356_s30 }
  0x95   : >> { %752 = vrot.lane.b32.xlu1 %v1222_v43, %s1356_s30  ;;  %v646_v55 = vpop.permute.xlu1 %645 }
  0x96   : >> { %v604_v0 = vpop.permute.xlu0 %603 }
  0x97   : >> { %v776_v12 = vsel %vm773_vm7, %v1194_v6, %v604_v0 }
  0x98   : >> { %769 = vrot.lane.b32.xlu0 %v1695_v60, %s1357_s4  ;;  %v800_v26 = vsel %vm798_vm8, %v776_v12, %v644_v48 }
  0x99   : >> { %771 = vrot.lane.b32.xlu1 %v1223_v47, %s1357_s4  ;;  %v703_v32 = vpop.permute.xlu1 %702  ;;  %v817_v49 = vsel %vm815_vm9, %v800_v26, %v663_v31 }
  0x9a   : >> { %v606_v35 = vpop.permute.xlu0 %605 }
  0x9b   : >> { %v779_v20 = vsel %vm773_vm7, %v1422_v11, %v606_v35 }
  0x9c   : >> { %v802_v58 = vsel %vm798_vm8, %v779_v20, %v646_v55 }
  0x9d   : >> { %v819_v19 = vsel %vm815_vm9, %v802_v58, %v665_v44 }
  0x9e   : >> { %v682_v42 = vpop.permute.xlu0 %681 }
  0x9f   : >> { %v684_v17 = vpop.permute.xlu1 %683  ;;  %v834_v63 = vsel %vm832_vm10, %v817_v49, %v682_v42 }
  0xa0   : >> { %v851_v11 = vsel %vm849_vm11, %v834_v63, %v701_v46  ;;  %v836_v61 = vsel %vm832_vm10, %v819_v19, %v684_v17 }
  0xa1   : >> { %v853_v29 = vsel %vm849_vm11, %v836_v61, %v703_v32 }
  0xa2   : >> { %v720_v28 = vpop.permute.xlu0 %719 }
  0xa3   : >> { %v722_v59 = vpop.permute.xlu1 %721  ;;  %v868_v3 = vsel %vm866_vm12, %v851_v11, %v720_v28 }
  0xa4   : >> { %v870_v16 = vsel %vm866_vm12, %v853_v29, %v722_v59 }
  0xa6   : >> { %v739_v22 = vpop.permute.xlu0 %738 }
  0xa7   : >> { %v741_v60 = vpop.permute.xlu1 %740  ;;  %v885_v8 = vsel %vm883_vm13, %v868_v3, %v739_v22 }
  0xa8   : >> { %v887_v57 = vsel %vm883_vm13, %v870_v16, %v741_v60 }
  0xaa   : >> { %v758_v9 = vpop.permute.xlu0 %757 }
  0xab   : >> { %v608_v10 = vpop.permute.xlu1 %607  ;;  %v902_v6 = vsel %vm900_vm14, %v885_v8, %v758_v9 }
  0xac   : >> { %1264 = vmatprep.mubr.msk.bf16.mxu0 %vm960_vm15, %v902_v6  ;;  %v782_v41 = vsel %vm773_vm7, %v1417_v5, %v608_v10 }
  0xae   : >> { %v760_v1 = vpop.permute.xlu0 %759 }
  0xaf   : >> { %v610_v7 = vpop.permute.xlu1 %609  ;;  %v904_v21 = vsel %vm900_vm14, %v887_v57, %v760_v1 }
  0xb0   : >> { %1265 = vmatmul.mubr.msk.bf16.vlgmr.msra.gmra.mxu0 %vm960_vm15, %v904_v21  ;;  %v785_v47 = vsel %vm773_vm7, %v1516_v54, %v610_v7 }
  0xb2   : >> { %v648_v23 = vpop.permute.xlu0 %647 }
  0xb3   : >> { %v650_v24 = vpop.permute.xlu1 %649  ;;  %v804_v15 = vsel %vm798_vm8, %v782_v41, %v648_v23 }
  0xb4   : >> { %v806_v50 = vsel %vm798_vm8, %v785_v47, %v650_v24 }
  0xb6   : >> { %v667_v25 = vpop.permute.xlu0 %666 }
  0xb7   : >> { %v669_v33 = vpop.permute.xlu1 %668  ;;  %v821_v37 = vsel %vm815_vm9, %v804_v15, %v667_v25 }
  0xb8   : >> { %v823_v52 = vsel %vm815_vm9, %v806_v50, %v669_v33 }
  0xba   : >> { %v686_v30 = vpop.permute.xlu0 %685 }
  0xbb   : >> { %v688_v34 = vpop.permute.xlu1 %687  ;;  %v838_v18 = vsel %vm832_vm10, %v821_v37, %v686_v30 }
  0xbc   : >> { %v840_v27 = vsel %vm832_vm10, %v823_v52, %v688_v34 }
  0xbe   : >> { %v705_v2 = vpop.permute.xlu0 %704 }
  0xbf   : >> { %v707_v36 = vpop.permute.xlu1 %706  ;;  %v855_v53 = vsel %vm849_vm11, %v838_v18, %v705_v2 }
  0xc0   : >> { %v857_v45 = vsel %vm849_vm11, %v840_v27, %v707_v36 }
  0xc2   : >> { %v724_v38 = vpop.permute.xlu0 %723 }
  0xc3   : >> { %v726_v40 = vpop.permute.xlu1 %725  ;;  %v872_v51 = vsel %vm866_vm12, %v855_v53, %v724_v38 }
  0xc4   : >> { %v874_v54 = vsel %vm866_vm12, %v857_v45, %v726_v40 }
  0xc6   : >> { %v743_v56 = vpop.permute.xlu0 %742 }
  0xc7   : >> { %v745_v43 = vpop.permute.xlu1 %744  ;;  %v889_v5 = vsel %vm883_vm13, %v872_v51, %v743_v56 }
  0xc8   : >> { %v891_v46 = vsel %vm883_vm13, %v874_v54, %v745_v43 }
  0xca   : >> { %v762_v14 = vpop.permute.xlu0 %761 }
  0xcb   : >> { %v612_v31 = vpop.permute.xlu1 %611  ;;  %v906_v44 = vsel %vm900_vm14, %v889_v5, %v762_v14 }
  0xcc   : >> { %1268 = vmatprep.mubr.msk.bf16.mxu0 %vm960_vm15, %v906_v44  ;;  %v788_v49 = vsel %vm773_vm7, %v1553_v4, %v612_v31 }
  0xce   : >> { %v764_v48 = vpop.permute.xlu0 %763 }
  0xcf   : >> { %v614_v55 = vpop.permute.xlu1 %613  ;;  %v908_v0 = vsel %vm900_vm14, %v891_v46, %v764_v48 }
  0xd0   : >> { %1269 = vmatmul.mubr.msk.bf16.gmra.mxu0 %vm960_vm15, %v908_v0  ;;  %v791_v61 = vsel %vm773_vm7, %v1578_v39, %v614_v55 }
  0xd2   : >> { %v652_v32 = vpop.permute.xlu0 %651 }
  0xd3   : >> { %v654_v35 = vpop.permute.xlu1 %653  ;;  %v808_v63 = vsel %vm798_vm8, %v788_v49, %v652_v32 }
  0xd4   : >> { %v810_v8 = vsel %vm798_vm8, %v791_v61, %v654_v35 }
  0xd6   : >> { %v671_v12 = vpop.permute.xlu0 %670 }
  0xd7   : >> { %v673_v42 = vpop.permute.xlu1 %672  ;;  %v825_v19 = vsel %vm815_vm9, %v808_v63, %v671_v12 }
  0xd8   : >> { %v827_v10 = vsel %vm815_vm9, %v810_v8, %v673_v42  ;;  %v1224_v42 = vld [vmem:[%s1930_s2] ss:$0 sm:$0xff] }
  0xda   : >> { %v690_v17 = vpop.permute.xlu0 %689 }
  0xdb   : >> { %v692_v20 = vpop.permute.xlu1 %691  ;;  %v842_v60 = vsel %vm832_vm10, %v825_v19, %v690_v17 }
  0xdc   : >> { %v844_v29 = vsel %vm832_vm10, %v827_v10, %v692_v20 }
  0xde   : >> { %v709_v26 = vpop.permute.xlu0 %708 }
  0xdf   : >> { %v711_v28 = vpop.permute.xlu1 %710  ;;  %v859_v3 = vsel %vm849_vm11, %v842_v60, %v709_v26 }
  0xe0   : >> { %v861_v1 = vsel %vm849_vm11, %v844_v29, %v711_v28 }
  0xe2   : >> { %v728_v58 = vpop.permute.xlu0 %727 }
  0xe3   : >> { %v730_v59 = vpop.permute.xlu1 %729  ;;  %v876_v9 = vsel %vm866_vm12, %v859_v3, %v728_v58 }
  0xe4   : >> { %v878_v39 = vsel %vm866_vm12, %v861_v1, %v730_v59 }
  0xe6   : >> { %v747_v22 = vpop.permute.xlu0 %746 }
  0xe7   : >> { %v749_v11 = vpop.permute.xlu1 %748  ;;  %v893_v4 = vsel %vm883_vm13, %v876_v9, %v747_v22 }
  0xe8   : >> { %v895_v7 = vsel %vm883_vm13, %v878_v39, %v749_v11 }
  0xea   : >> { %v766_v6 = vpop.permute.xlu0 %765 }
  0xeb   : >> { %v616_v16 = vpop.permute.xlu1 %615  ;;  %v910_v57 = vsel %vm900_vm14, %v893_v4, %v766_v6 }
  0xec   : >> { %1272 = vmatprep.mubr.msk.bf16.mxu1 %vm960_vm15, %v910_v57  ;;  %v794_v37 = vsel %vm773_vm7, %v1770_v62, %v616_v16 }
  0xee   : >> { %v768_v21 = vpop.permute.xlu0 %767 }
  0xef   : >> { %v618_v23 = vpop.permute.xlu1 %617  ;;  %v912_v24 = vsel %vm900_vm14, %v895_v7, %v768_v21 }
  0xf0   : >> { %1273 = vmatmul.mubr.msk.bf16.vlgmr.msra.gmra.mxu1 %vm960_vm15, %v912_v24  ;;  %v797_v56 = vsel %vm773_vm7, %v1784_v13, %v618_v23 }
  0xf2   : >> { %v656_v25 = vpop.permute.xlu0 %655 }
  0xf3   : >> { %v658_v33 = vpop.permute.xlu1 %657  ;;  %v812_v18 = vsel %vm798_vm8, %v794_v37, %v656_v25 }
  0xf4   : >> { %v814_v43 = vsel %vm798_vm8, %v797_v56, %v658_v33 }
  0xf6   : >> { %v675_v30 = vpop.permute.xlu0 %674 }
  0xf7   : >> { %v677_v34 = vpop.permute.xlu1 %676  ;;  %v829_v47 = vsel %vm815_vm9, %v812_v18, %v675_v30 }
  0xf8   : >> { %v831_v50 = vsel %vm815_vm9, %v814_v43, %v677_v34 }
  0xfa   : >> { %v694_v2 = vpop.permute.xlu0 %693 }
  0xfb   : >> { %v696_v36 = vpop.permute.xlu1 %695  ;;  %v846_v51 = vsel %vm832_vm10, %v829_v47, %v694_v2 }
  0xfc   : >> { %v848_v5 = vsel %vm832_vm10, %v831_v50, %v696_v36 }
  0xfe   : >> { %v713_v38 = vpop.permute.xlu0 %712 }
  0xff   : >> { %v715_v40 = vpop.permute.xlu1 %714  ;;  %v863_v14 = vsel %vm849_vm11, %v846_v51, %v713_v38 }
 0x100   : >> { %v865_v62 = vsel %vm849_vm11, %v848_v5, %v715_v40 }
 0x102   : >> { %v732_v41 = vpop.permute.xlu0 %731 }
 0x103   : >> { %v734_v15 = vpop.permute.xlu1 %733  ;;  %v880_v13 = vsel %vm866_vm12, %v863_v14, %v732_v41 }
 0x104   : >> { %v882_v27 = vsel %vm866_vm12, %v865_v62, %v734_v15 }
 0x106   : >> { %v751_v53 = vpop.permute.xlu0 %750 }
 0x107   : >> { %v753_v52 = vpop.permute.xlu1 %752  ;;  %v897_v31 = vsel %vm883_vm13, %v880_v13, %v751_v53 }
 0x108   : >> { %v899_v45 = vsel %vm883_vm13, %v882_v27, %v753_v52 }
 0x10a   : >> { %v770_v44 = vpop.permute.xlu0 %769 }
 0x10b   : >> { %v772_v54 = vpop.permute.xlu1 %771  ;;  %v914_v46 = vsel %vm900_vm14, %v897_v31, %v770_v44 }
 0x10c   : >> { %v916_v48 = vsel %vm900_vm14, %v899_v45, %v772_v54  ;;  %1276 = vmatprep.mubr.msk.bf16.mxu1 %vm960_vm15, %v914_v46 }
 0x10d   : >> { %1277 = vmatmul.mubr.msk.bf16.gmra.mxu1 %vm960_vm15, %v916_v48 }
 0x170   : >> { %v1266_v55 = vpop.f32.mrf.mxu0 }
 0x171   : >> { %v1024_v59 = vadd.f32 %v1266_v55, %v1224_v42 }
 0x172   : >> { %v1015_v0 = vpop.f32.mrf.mxu0 }
 0x173   : >> { %v1016_v26 = vadd.f32 %v1224_v42, %v1015_v0  ;;  %v1080_v60 = vmax.f32 %v1024_v59, 0.0 }
 0x174   : >> { %v1267_v32 = vpop.f32.mrf.mxu0 }
 0x175   : >> { %v1078_v49 = vmax.f32 %v1016_v26, 0.0  ;;  %v1027_v11 = vadd.f32 %v1267_v32, %v1224_v42 }
 0x176   : >> { %v1018_v35 = vpop.f32.mrf.mxu0 }
 0x177   : >> { %v1019_v17 = vadd.f32 %v1224_v42, %v1018_v35  ;;  %v1081_v10 = vmax.f32 %v1027_v11, 0.0 }
 0x179   : >> { %v1079_v28 = vmax.f32 %v1019_v17, 0.0  ;;  %v1094_v17 = vld [vmem:[#allocation2] sm:$0x1] }
 0x17b   : >> { %v1095_v63 = vadd.f32 %v1079_v28, %v1078_v49 }
 0x17d   : >> { %v1096_v3 = vadd.f32 %v1095_v63, %v1080_v60 }
 0x17f   : >> { %v1097_v6 = vadd.f32 %v1096_v3, %v1081_v10 }
 0x190   : >> { %v1270_v12 = vpop.f32.mrf.mxu0 }
 0x191   : >> { %v1040_v57 = vadd.f32 %v1270_v12, %v1224_v42 }
 0x192   : >> { %v1031_v20 = vpop.f32.mrf.mxu0 }
 0x193   : >> { %v1032_v61 = vadd.f32 %v1224_v42, %v1031_v20  ;;  %v1084_v21 = vmax.f32 %v1040_v57, 0.0 }
 0x194   : >> { %v1271_v58 = vpop.f32.mrf.mxu0 }
 0x195   : >> { %v1082_v4 = vmax.f32 %v1032_v61, 0.0  ;;  %v1043_v23 = vadd.f32 %v1271_v58, %v1224_v42 }
 0x196   : >> { %v1034_v19 = vpop.f32.mrf.mxu0 }
 0x197   : >> { %v1035_v8 = vadd.f32 %v1224_v42, %v1034_v19  ;;  %v1098_v1 = vadd.f32 %v1097_v6, %v1082_v4  ;;  %v1085_v30 = vmax.f32 %v1043_v23, 0.0 }
 0x199   : >> { %v1083_v29 = vmax.f32 %v1035_v8, 0.0 }
 0x19b   : >> { %v1099_v39 = vadd.f32 %v1098_v1, %v1083_v29 }
 0x19d   : >> { %v1100_v25 = vadd.f32 %v1099_v39, %v1084_v21 }
 0x19f   : >> { %v1101_v2 = vadd.f32 %v1100_v25, %v1085_v30 }
 0x1b0   : >> { %v1274_v22 = vpop.f32.mrf.mxu1 }
 0x1b1   : >> { %v1056_v38 = vadd.f32 %v1274_v22, %v1224_v42 }
 0x1b2   : >> { %v1047_v9 = vpop.f32.mrf.mxu1 }
 0x1b3   : >> { %v1048_v24 = vadd.f32 %v1224_v42, %v1047_v9  ;;  %v1088_v37 = vmax.f32 %v1056_v38, 0.0 }
 0x1b4   : >> { %v1275_v16 = vpop.f32.mrf.mxu1 }
 0x1b5   : >> { %v1086_v34 = vmax.f32 %v1048_v24, 0.0  ;;  %v1059_v56 = vadd.f32 %v1275_v16, %v1224_v42 }
 0x1b6   : >> { %v1050_v7 = vpop.f32.mrf.mxu1 }
 0x1b7   : >> { %v1051_v33 = vadd.f32 %v1224_v42, %v1050_v7  ;;  %v1102_v40 = vadd.f32 %v1101_v2, %v1086_v34  ;;  %v1089_v50 = vmax.f32 %v1059_v56, 0.0 }
 0x1b9   : >> { %v1087_v36 = vmax.f32 %v1051_v33, 0.0 }
 0x1bb   : >> { %v1103_v41 = vadd.f32 %v1102_v40, %v1087_v36 }
 0x1bd   : >> { %v1104_v43 = vadd.f32 %v1103_v41, %v1088_v37 }
 0x1bf   : >> { %v1105_v14 = vadd.f32 %v1104_v43, %v1089_v50 }
 0x1cd   : >> { %v1278_v15 = vpop.f32.mrf.mxu1 }
 0x1ce   : >> { %v1072_v5 = vadd.f32 %v1278_v15, %v1224_v42 }
 0x1cf   : >> { %v1063_v18 = vpop.f32.mrf.mxu1 }
 0x1d0   : >> { %v1064_v47 = vadd.f32 %v1224_v42, %v1063_v18  ;;  %v1092_v44 = vmax.f32 %v1072_v5, 0.0 }
 0x1d1   : >> { %v1279_v53 = vpop.f32.mrf.mxu1 }
 0x1d2   : >> { %v1090_v51 = vmax.f32 %v1064_v47, 0.0  ;;  %v1075_v27 = vadd.f32 %v1279_v53, %v1224_v42 }
 0x1d3   : >> { %v1066_v52 = vpop.f32.mrf.mxu1 }
 0x1d4   : >> { %v1067_v62 = vadd.f32 %v1224_v42, %v1066_v52  ;;  %v1106_v13 = vadd.f32 %v1105_v14, %v1090_v51  ;;  %v1093_v54 = vmax.f32 %v1075_v27, 0.0 }
 0x1d6   : >> { %v1091_v31 = vmax.f32 %v1067_v62, 0.0 }
 0x1d8   : >> { %v1107_v45 = vadd.f32 %v1106_v13, %v1091_v31 }
 0x1da   : >> { %v1108_v46 = vadd.f32 %v1107_v45, %v1092_v44 }
 0x1dc   : >> { %v1109_v48 = vadd.f32 %v1108_v46, %v1093_v54 }
 0x1de   : >> { %v1110_v55 = vrot.slane %v1109_v48, 4 }
 0x1e0   : >> { %v1111_v0 = vadd.f32 %v1110_v55, %v1109_v48 }
 0x1e2   : >> { %v1112_v32 = vrot.slane %v1111_v0, 2 }
 0x1e4   : >> { %v1113_v35 = vadd.f32 %v1112_v32, %v1111_v0 }
 0x1e6   : >> { %v1114_v12 = vrot.slane %v1113_v35, 1 }
 0x1e8   : >> { %v1115_v20 = vadd.f32 %v1114_v12, %v1113_v35  ;;  %173 = sbr.rel (!%p171_p4) target bundleno = 15 (0xf), region = 70 }
 0x1ea   : >> { %v1116_v26 = vadd.f32 %v1115_v20, %v1094_v17 }
 0x1ec   : >> { %1117 = vst [vmem:[#allocation2] sm:$0x1] %v1116_v26 }
 0x1f3   : > { %v1118_v42 = vld [vmem:[#allocation2] sm:$0x1] }
 0x1f4   : > { %v1119_v28 = vmul.f32 0.00390625, %v1118_v42 }
 0x1f6   : > { %1120 = vst [vmem:[%s166_s17] sm:$0x1] %v1119_v28 }
 0x1f7 PF: > { %s13_s12 = sadd.s32 1, %s1343_s12  }
 0x1f8   : > { %p10_p5 = scmp.ge.s32.totalorder %s13_s12, 4  }
 0x1fa   :  { %12 = sbr.rel (!%p10_p5) target bundleno = 1 (0x1), region = 81 }

</bundles_post_ra>
